<compile_context>
chip_gen: v6e
topology: v6e:2x2x1
jax: 0.10.0
libtpu: 0.0.40
codegen_flags: <defaults>
</compile_context>

<pallas_src>
import math

import jax
import jax.numpy as jnp
from jax.experimental import pallas as pl
from jax.experimental.pallas import tpu as pltpu

_SQRT2 = math.sqrt(2.0)
_LANE_CHOICES = (1024, 512, 256, 128)  # lane-dense last dims (multiples of 128)
_MAX_TILE_ROWS = 512                   # 512 x 1024 f32 = 2 MiB per buffer
_TARGET_GRID_STEPS = 8                 # keep several pipeline steps / an even v7x split


def _round_up(a, b):
    return ((a + b - 1) // b) * b


def graphlu_kernel(sigma_ref, x_ref, o_ref):
    # sigma_ref: (1,) f32 in SMEM (scalar prefetch).
    # x_ref / o_ref: (tile_r, lanes) tiles in VMEM, in the original I/O dtype.
    inv_denom = 1.0 / (jnp.float32(_SQRT2) + sigma_ref[0])  # scalar path, once per tile
    x = x_ref[...].astype(jnp.float32)                      # compute in f32 (safe on v5e)
    # x * 0.5 * (1 + erf(x/denom))  ==  x * (0.5 + 0.5*erf(x*inv_denom))
    y = x * (0.5 + 0.5 * jax.lax.erf(x * inv_denom))
    o_ref[...] = y.astype(o_ref.dtype)


def graphlu(x, sigma):
    """GraphLU forward. x: floating tensor (NCHW in the PyTorch module); sigma: scalar."""
    orig_shape = x.shape
    orig_dtype = x.dtype
    total = x.size

    # Keep HBM I/O in the input dtype; only promote non-float inputs.
    if not jnp.issubdtype(orig_dtype, jnp.floating):
        x = x.astype(jnp.float32)
    io_dtype = x.dtype
    itemsize = jnp.dtype(io_dtype).itemsize
    sub = {4: 8, 2: 16, 1: 32}.get(itemsize, 8)  # sublane packing granularity

    # Widest lane count that divides the element count -> reshape is a free bitcast.
    lanes = next((l for l in _LANE_CHOICES if total % l == 0), None)
    padded = lanes is None
    if padded:
        # Rare fallback: no 128-multiple divides the size; minimal zero padding
        # (graphlu(0) = 0 and padded elements are sliced off afterwards).
        lanes = 128
        rows = pl.cdiv(total, lanes)
        x2 = jnp.pad(x.reshape(-1), (0, rows * lanes - total)).reshape(rows, lanes)
    else:
        rows = total // lanes
        x2 = x.reshape(rows, lanes)

    # Row tile: sublane-aligned, VMEM-safe, and small enough that medium tensors still
    # get ~_TARGET_GRID_STEPS pipeline steps. Rows need not be a multiple of tile_r:
    # Pallas masks the ragged final block (OOB reads padded, OOB writes discarded;
    # harmless since the kernel is purely elementwise with no reductions).
    if rows <= sub:
        tile_r = rows  # block spans the full dim (allowed even if < 8)
    else:
        tile_r = min(_MAX_TILE_ROWS,
                     _round_up(pl.cdiv(rows, _TARGET_GRID_STEPS), sub))
    grid = (pl.cdiv(rows, tile_r),)

    # NOTE: sigma -> -sqrt(2) divergence is intentionally unclamped to match PyTorch.
    sigma1 = jnp.reshape(sigma, (1,)).astype(jnp.float32)

    out2 = pl.pallas_call(
        graphlu_kernel,
        out_shape=jax.ShapeDtypeStruct((rows, lanes), io_dtype),
        grid_spec=pltpu.PrefetchScalarGridSpec(
            num_scalar_prefetch=1,
            grid=grid,
            in_specs=[pl.BlockSpec((tile_r, lanes), lambda i, sig: (i, 0))],
            out_specs=pl.BlockSpec((tile_r, lanes), lambda i, sig: (i, 0)),
        ),
        compiler_params=pltpu.CompilerParams(
            dimension_semantics=("parallel",),
        ),
    )(sigma1, x2)

    out = out2.reshape(-1)[:total] if padded else out2
    return out.reshape(orig_shape).astype(orig_dtype)


def graphlu_ref(x, sigma):
    # Pure-JAX reference for correctness checking.
    return x * 0.5 * (1.0 + jax.lax.erf(x / (math.sqrt(2.0) + sigma)))


if __name__ == "__main__":
    # Deterministic parameter init, matching nn.Parameter(sqrt(2) * ones(1)).
    sigma = jnp.asarray(math.sqrt(2.0), dtype=jnp.float32)

    # Primary test: NCHW activation whose size divides 1024 -> zero-copy slab, grid=(1,).
    x = jax.random.normal(jax.random.PRNGKey(0), (2, 4, 16, 16), dtype=jnp.float32)
    out = jax.block_until_ready(graphlu(x, sigma))
    assert out.shape == x.shape and out.dtype == x.dtype
    assert jnp.allclose(out, graphlu_ref(x, sigma), atol=1e-5, rtol=1e-5), "mismatch (primary)"

    # Ragged-final-block path: rows (15) not a multiple of tile_r (8) -> masked last block.
    x2 = jax.random.normal(jax.random.PRNGKey(1), (2, 4, 30, 16), dtype=jnp.float32)
    o2 = jax.block_until_ready(graphlu(x2, sigma))
    assert jnp.allclose(o2, graphlu_ref(x2, sigma), atol=1e-5, rtol=1e-5), "mismatch (ragged)"

    # Fallback pad path: no 128-multiple divides the element count.
    x3 = jax.random.normal(jax.random.PRNGKey(2), (2, 3, 5, 7), dtype=jnp.float32)
    o3 = jax.block_until_ready(graphlu(x3, sigma))
    assert jnp.allclose(o3, graphlu_ref(x3, sigma), atol=1e-5, rtol=1e-5), "mismatch (fallback)"

    print("KERNEL_OK")
</pallas_src>

<mosaic_0001>
module attributes {stable_mosaic.version = 11 : i64} {
  func.func @graphlu_kernel(%arg0: i32, %arg1: memref<1xf32, #tpu.memory_space<smem>>, %arg2: memref<2x1024xf32, #tpu.memory_space<vmem>>, %arg3: memref<2x1024xf32, #tpu.memory_space<vmem>>) attributes {dimension_semantics = [#tpu.dimension_semantics<parallel>], iteration_bounds = array<i64: 1>, scalar_prefetch = 1 : i64, scratch_operands = 0 : i64, tpu.core_type = #tpu.core_type<tc>, window_params = [{transform_indices = @transform_0, window_bounds = array<i64: 2, 1024>}, {transform_indices = @transform_1, window_bounds = array<i64: 2, 1024>}]} {
    %c0 = arith.constant 0 : index
    %0 = memref.load %arg1[%c0] : memref<1xf32, #tpu.memory_space<smem>>
    %cst = arith.constant 1.41421354 : f32
    %1 = arith.addf %cst, %0 : f32
    %cst_0 = arith.constant 1.000000e+00 : f32
    %2 = arith.divf %cst_0, %1 : f32
    %c0_1 = arith.constant 0 : index
    %c0_2 = arith.constant 0 : index
    %3 = vector.load %arg2[%c0_1, %c0_2] : memref<2x1024xf32, #tpu.memory_space<vmem>>, vector<2x1024xf32>
    %4 = vector.broadcast %2 : f32 to vector<2x1024xf32>
    %5 = arith.mulf %3, %4 : vector<2x1024xf32>
    %6 = math.erf %5 : vector<2x1024xf32>
    %cst_3 = arith.constant 5.000000e-01 : f32
    %7 = vector.broadcast %cst_3 : f32 to vector<2x1024xf32>
    %8 = arith.mulf %7, %6 : vector<2x1024xf32>
    %cst_4 = arith.constant 5.000000e-01 : f32
    %9 = vector.broadcast %cst_4 : f32 to vector<2x1024xf32>
    %10 = arith.addf %9, %8 : vector<2x1024xf32>
    %11 = arith.mulf %3, %10 : vector<2x1024xf32>
    %c0_5 = arith.constant 0 : index
    %c0_6 = arith.constant 0 : index
    %12 = vector.load %arg3[%c0_5, %c0_6] : memref<2x1024xf32, #tpu.memory_space<vmem>>, vector<2x1024xf32>
    tpu.vector_store %arg3[%c0_5, %c0_6], %11 {strides = array<i32>} : memref<2x1024xf32, #tpu.memory_space<vmem>>, vector<2x1024xf32>,
    return
  }
  func.func @transform_0(%arg0: i32, %arg1: memref<1xf32, #tpu.memory_space<smem>>) -> (i32, i32) {
    %c0_i32 = arith.constant 0 : i32
    %c0_i32_0 = arith.constant 0 : i32
    return %arg0, %c0_i32 : i32, i32
  }
  func.func @transform_1(%arg0: i32, %arg1: memref<1xf32, #tpu.memory_space<smem>>) -> (i32, i32) {
    %c0_i32 = arith.constant 0 : i32
    %c0_i32_0 = arith.constant 0 : i32
    return %arg0, %c0_i32 : i32, i32
  }
}

</mosaic_0001>

<bundles_post_ra>
// kernel: tpu_custom_call.1
= control target key start
LH: loop header
LB: loop body
LE: loop exit
PB: predicated region body
PF: predicated region fallthrough
CT: control target
= control target key end

     0   :  { %8 = vsyncpa [#allocation5], 0  ;;  %s138_s0 = inlined_call_operand.<no memory space> [shape: f32[1], index: 0, kind: input, shape index: {}]   ;;  %s139_s1 = inlined_call_operand.hbm [shape: f32[2,1024], index: 1, kind: input, shape index: {}]   ;;  %s140_s2 = inlined_call_operand.hbm [shape: f32[2,1024], index: 2, kind: output, shape index: {}]  }
   0x1   :  { %9 = vsyncpa [#allocation6], 0  ;;  %s112_s9 = smov [#allocation4]  }
   0x2   :  { %s16_s10 = sshll.u32 %s112_s9, 4  ;;  %s17_s10 = int_to_ptr.vmem [resolvable:$true] %s16_s10 }
   0x3   :  { %s76_s11 = scalar_lea.vmem %s17_s10, 256  ;;  %p81_p1 = scmp.lt.s32.totalorder %s17_s10, %s17_s10 }
   0x4   :  { %p77_p0 = scmp.ne.s32.totalorder %s17_s10, %s76_s11  ;;  %p82_p2 = scmp.lt.s32.totalorder %s76_s11, %s76_s11 }
   0x6   :  { %p83_p3 = por %p82_p2, %p81_p1 }
   0x8   :  { %p84_p4 = pnand %p83_p3, %p77_p0 }
   0xa   :  { %87 = shalt.err (!%p84_p4)
}
   0xb   :  { %19 = dma.hbm_to_vmem [thread:$0]  %s139_s1, 256, %s17_s10, [#allocation5]  }
   0xc   :  { %s24_s16 = sadd.f32 1.4142135, %s138_s0 }
   0xd   :  { %108 = dma.done.wait [#allocation5], 256  }
   0xe   :  { %109 = vsyncadd [#allocation5], 4294967040  ;;  %v25_v0 = vstv %s24_s16  ;;  %v28_v2 = vld [vmem:[#allocation4] sm:$0xff]  ;;  %v29_v3 = vld [vmem:[#allocation4 + $0x8] sm:$0xff]  ;;  %s113_s0 = smov [#allocation7]  }
   0xf   :  { %62 = vrcp.f32 %v25_v0  ;;  %s49_s1 = sshll.u32 %s113_s0, 4  ;;  %s50_s1 = int_to_ptr.vmem [resolvable:$true] %s49_s1 }
  0x10   :  { %s88_s18 = scalar_lea.vmem %s50_s1, 256  ;;  %p93_p6 = scmp.lt.s32.totalorder %s50_s1, %s50_s1 }
  0x11   :  { %p89_p5 = scmp.ne.s32.totalorder %s50_s1, %s88_s18  ;;  %p94_p7 = scmp.lt.s32.totalorder %s88_s18, %s88_s18 }
  0x13   :  { %p95_p8 = por %p94_p7, %p93_p6 }
  0x15   :  { %p96_p9 = pnand %p95_p8, %p89_p5 }
  0x1c   :  { %v63_v1 = vpop.eup %62 }
  0x1d   :  { %58 = vpush %v63_v1 }
  0x4e   :  { %s59_s17 = spop %58 }
  0x4f   :  { %v30_v4 = vstv %s59_s17 }
  0x50   :  { %v31_v5 = vmul.f32 %v30_v4, %v28_v2  ;;  %v32_v6 = vmul.f32 %v30_v4, %v29_v3 }
  0x52   :  { %64 = verf.f32 %v31_v5 }
  0x53   :  { %66 = verf.f32 %v32_v6 }
  0x5f   :  { %v65_v7 = vpop.eup %64 }
  0x60   :  { %v67_v8 = vpop.eup %66  ;;  %v35_v9 = vmul.f32 0.5, %v65_v7 }
  0x61   :  { %v36_v10 = vmul.f32 0.5, %v67_v8 }
  0x62   :  { %v37_v11 = vadd.f32 0.5, %v35_v9 }
  0x63   :  { %v38_v12 = vadd.f32 0.5, %v36_v10 }
  0x64   :  { %v39_v13 = vmul.f32 %v37_v11, %v28_v2 }
  0x65   :  { %v40_v14 = vmul.f32 %v38_v12, %v29_v3 }
  0x66   :  { %41 = vst [vmem:[#allocation7] sm:$0xff] %v39_v13 }
  0x67   :  { %42 = vst [vmem:[#allocation7 + $0x8] sm:$0xff] %v40_v14 }
  0x68   :  { %99 = shalt.err (!%p96_p9)
}
  0x69   :  { %52 = dma.vmem_to_hbm [thread:$0]  %s50_s1, 256, %s140_s2, [#allocation6]  }
  0x6a   :  { %110 = dma.done.wait [#allocation6], 256  }
  0x6b   :  { %111 = vsyncadd [#allocation6], 4294967040 }
  0x6c   :  { %56 = vsyncpa [#allocation5], 1 }
  0x6d   :  { %57 = vsyncpa [#allocation6], 1 }

</bundles_post_ra>
